<compile_context>
chip_gen: v6e
topology: v6e:2x2x1
jax: 0.10.0
libtpu: 0.0.40
codegen_flags: <defaults>
</compile_context>

<pallas_src>
import functools

import jax
import jax.numpy as jnp
from jax.experimental import pallas as pl
from jax.experimental.pallas import tpu as pltpu

BN_EPS = 1e-5


def _round_up(a, b):
    return ((a + b - 1) // b) * b


def _cdiv(a, b):
    return (a + b - 1) // b


def _choose_tile(tile_n, n):
    """Batch-tile size: multiples of 256 (v6e/v7x MXU M-dim) when large,
    128 otherwise; never larger than the (aligned) batch extent."""
    align = 256 if tile_n >= 256 else 128
    tile_n = _round_up(max(int(tile_n), align), align)
    tile_n = min(tile_n, _round_up(n, align))
    return int(tile_n)


def _vmem_limit_bytes():
    """Scoped-VMEM budget: half of physical VMEM, capped at 64 MiB.
    -> 64 MiB on v5e/v6e (128 MiB physical), 32 MiB on v7x (64 MiB physical)."""
    try:
        cap = int(pltpu.get_tpu_info().vmem_capacity_bytes)
    except Exception:  # interpret mode / older API — fall back to a safe value
        cap = 64 * 1024 * 1024
    return int(min(cap // 2, 64 * 1024 * 1024))


def _linear_stats_kernel(x_ref, w1_ref, h_ref, sum_ref, sumsq_ref, *, n_rows, tile_n):
    """h = x @ W1 (bf16 in / f32 acc); per-tile f32 sum / sum-of-squares; h stored bf16."""
    h = jnp.dot(x_ref[...].astype(jnp.bfloat16), w1_ref[...],
                preferred_element_type=jnp.float32)
    if n_rows % tile_n != 0:
        # Ragged last tile: rows >= n_rows hold unspecified boundary-block data.
        # Zero them so the statistics stay exact; their h writes are dropped by
        # the clipped write-back anyway.
        i = pl.program_id(0)
        row = jax.lax.broadcasted_iota(jnp.int32, (tile_n, 1), 0) + i * tile_n
        h = jnp.where(row < n_rows, h, 0.0)
    h_ref[...] = h.astype(h_ref.dtype)
    hidden = h.shape[1]
    # Stats accumulate per tile in f32 (finalized in the wrapper; max(var,0)
    # guards fp cancellation). Per-tile partials also reduce accumulation error.
    sum_ref[...] = jnp.sum(h, axis=0, keepdims=True).reshape(1, 1, hidden)
    sumsq_ref[...] = jnp.sum(h * h, axis=0, keepdims=True).reshape(1, 1, hidden)


def _bn_relu_linear_kernel(h_ref, scale_ref, shift_ref, w2_ref, b2_ref, o_ref):
    """out = relu(f32(h) * scale + shift) @ W2 + b2  (BN folded into one FMA sweep)."""
    a = jnp.maximum(h_ref[...].astype(jnp.float32) * scale_ref[...] + shift_ref[...], 0.0)
    out = jnp.dot(a.astype(jnp.bfloat16), w2_ref[...],
                  preferred_element_type=jnp.float32) + b2_ref[...]
    o_ref[...] = out.astype(o_ref.dtype)


def projection_head(x, w1, b1, gamma, beta, w2, b2, *, tile_n=512):
    """x: (N, input_dim); w1: (input_dim, hidden_dim); w2: (hidden_dim, output_dim).

    tile_n: batch-tile size. The scoped-VMEM budget (not physical VMEM) is the
    binding constraint; 512-1024 sits near the HBM roofline on all generations
    with the bf16 intermediate. W1/W2 are held resident in VMEM — fine for
    dims up to a few thousand at bf16; tile D/H with an extra reduction grid
    axis if the weights ever outgrow the budget.
    """
    N, D = x.shape
    H = w1.shape[1]
    O = w2.shape[1]
    del b1  # No-op under train-mode BatchNorm (mean subtraction cancels it exactly).

    tile_n = _choose_tile(tile_n, N)
    grid_n = _cdiv(N, tile_n)
    vmem_limit = _vmem_limit_bytes()

    w1_bf = w1.astype(jnp.bfloat16)
    w2_bf = w2.astype(jnp.bfloat16)

    # ---------------- Phase 1: Linear 1 + per-tile batch statistics ----------------
    n_work = grid_n * tile_n
    x_bytes = N * D * jnp.dtype(x.dtype).itemsize
    cost1 = pl.CostEstimate(
        flops=2 * n_work * D * H + 3 * n_work * H,
        transcendentals=0,
        bytes_accessed=int(x_bytes + D * H * 2 + N * H * 2 + 2 * grid_n * H * 4))
    kernel1 = functools.partial(_linear_stats_kernel, n_rows=N, tile_n=tile_n)
    h, part_sum, part_sumsq = pl.pallas_call(
        kernel1,
        out_shape=(jax.ShapeDtypeStruct((N, H), jnp.bfloat16),
                   jax.ShapeDtypeStruct((grid_n, 1, H), jnp.float32),
                   jax.ShapeDtypeStruct((grid_n, 1, H), jnp.float32)),
        grid_spec=pltpu.PrefetchScalarGridSpec(
            num_scalar_prefetch=0,
            grid=(grid_n,),
            in_specs=[pl.BlockSpec((tile_n, D), lambda i: (i, 0)),      # x tile (native dtype)
                      pl.BlockSpec((D, H), lambda i: (0, 0))],          # full W1 (bf16)
            out_specs=[pl.BlockSpec((tile_n, H), lambda i: (i, 0)),     # h tile (bf16)
                       pl.BlockSpec((1, 1, H), lambda i: (i, 0, 0)),    # per-tile sum
                       pl.BlockSpec((1, 1, H), lambda i: (i, 0, 0))]),  # per-tile sumsq
        compiler_params=pltpu.CompilerParams(
            dimension_semantics=("parallel",),
            vmem_limit_bytes=vmem_limit),
        cost_estimate=cost1,
    )(x, w1_bf)

    # ------ Reduce partials + fold BN into per-feature scale/shift (O(grid_n*H)) ------
    h_sum = jnp.sum(part_sum[:, 0, :], axis=0, keepdims=True)        # (1, H)
    h_sumsq = jnp.sum(part_sumsq[:, 0, :], axis=0, keepdims=True)    # (1, H)
    inv_n = jnp.float32(1.0 / N)
    mean = h_sum * inv_n
    var = jnp.maximum(h_sumsq * inv_n - mean * mean, 0.0)            # guard fp cancellation
    scale = gamma.reshape(1, H).astype(jnp.float32) * jax.lax.rsqrt(var + BN_EPS)
    shift = beta.reshape(1, H).astype(jnp.float32) - mean * scale

    # ---------------- Phase 2: normalize + ReLU + Linear 2 ----------------
    out_itemsize = jnp.dtype(x.dtype).itemsize
    cost2 = pl.CostEstimate(
        flops=2 * n_work * H * O + 3 * n_work * H,
        transcendentals=0,
        bytes_accessed=int(N * H * 2 + 2 * H * 4 + H * O * 2 + O * 4
                           + N * O * out_itemsize))
    out = pl.pallas_call(
        _bn_relu_linear_kernel,
        out_shape=jax.ShapeDtypeStruct((N, O), x.dtype),
        grid_spec=pltpu.PrefetchScalarGridSpec(
            num_scalar_prefetch=0,
            grid=(grid_n,),
            in_specs=[pl.BlockSpec((tile_n, H), lambda i: (i, 0)),   # h tile (bf16)
                      pl.BlockSpec((1, H), lambda i: (0, 0)),        # scale
                      pl.BlockSpec((1, H), lambda i: (0, 0)),        # shift
                      pl.BlockSpec((H, O), lambda i: (0, 0)),        # full W2 (bf16)
                      pl.BlockSpec((1, O), lambda i: (0, 0))],       # b2
            out_specs=pl.BlockSpec((tile_n, O), lambda i: (i, 0))),
        compiler_params=pltpu.CompilerParams(
            dimension_semantics=("parallel",),
            vmem_limit_bytes=vmem_limit),
        cost_estimate=cost2,
    )(h, scale, shift, w2_bf, b2.reshape(1, O).astype(jnp.float32))

    return out


def projection_head_ref(x, w1, b1, gamma, beta, w2, b2):
    """Pure-JAX reference mirroring the PyTorch forward (train-mode BatchNorm1d),
    with the same bf16-input / f32-accumulate matmul precision as the kernel.
    (The kernel additionally stores the hidden activations in bf16.)"""
    h = jnp.dot(x.astype(jnp.bfloat16), w1.astype(jnp.bfloat16),
                preferred_element_type=jnp.float32) + b1
    mean = jnp.mean(h, axis=0, keepdims=True)
    var = jnp.mean((h - mean) ** 2, axis=0, keepdims=True)
    h = (h - mean) * jax.lax.rsqrt(var + BN_EPS) * gamma + beta
    h = jnp.maximum(h, 0.0)
    out = jnp.dot(h.astype(jnp.bfloat16), w2.astype(jnp.bfloat16),
                  preferred_element_type=jnp.float32) + b2
    return out.astype(x.dtype)


if __name__ == "__main__":
    # Small shapes consistent with the module (defaults 1280/1280/128), scaled
    # down but chosen to exercise a multi-step grid plus a ragged last tile:
    # N=200 with tile_n=128 -> 2 grid steps, last tile has only 72 valid rows.
    N, INPUT_DIM, HIDDEN_DIM, OUTPUT_DIM = 200, 256, 256, 128
    TILE_N = 128

    key = jax.random.PRNGKey(0)
    kx, k1, kb1, k2, kb2, kg, kb = jax.random.split(key, 7)

    x = jax.random.normal(kx, (N, INPUT_DIM), dtype=jnp.float32)

    # Deterministic synthetic parameters.
    w1 = jax.random.normal(k1, (INPUT_DIM, HIDDEN_DIM), jnp.float32) * (1.0 / INPUT_DIM ** 0.5)
    b1 = jax.random.normal(kb1, (HIDDEN_DIM,), jnp.float32) * 0.01
    gamma = 1.0 + 0.1 * jax.random.normal(kg, (HIDDEN_DIM,), jnp.float32)
    beta = 0.1 * jax.random.normal(kb, (HIDDEN_DIM,), jnp.float32)
    w2 = jax.random.normal(k2, (HIDDEN_DIM, OUTPUT_DIM), jnp.float32) * (1.0 / HIDDEN_DIM ** 0.5)
    b2 = jax.random.normal(kb2, (OUTPUT_DIM,), jnp.float32) * 0.01

    out = projection_head(x, w1, b1, gamma, beta, w2, b2, tile_n=TILE_N)
    out = jax.block_until_ready(out)

    ref = projection_head_ref(x, w1, b1, gamma, beta, w2, b2)
    assert out.shape == (N, OUTPUT_DIM), out.shape
    max_err = float(jnp.max(jnp.abs(out - ref)))
    # Tolerance accounts for the bf16 storage of the hidden activations.
    assert jnp.allclose(out, ref, atol=1e-2, rtol=1e-2), max_err

    print("KERNEL_OK")
</pallas_src>

<mosaic_0001>
module attributes {stable_mosaic.version = 11 : i64} {
  func.func @_linear_stats_kernel(%arg0: i32, %arg1: memref<128x256xf32, #tpu.memory_space<vmem>>, %arg2: memref<256x256xbf16, #tpu.memory_space<vmem>>, %arg3: memref<128x256xbf16, #tpu.memory_space<vmem>>, %arg4: memref<1x1x256xf32, #tpu.memory_space<vmem>>, %arg5: memref<1x1x256xf32, #tpu.memory_space<vmem>>) attributes {dimension_semantics = [#tpu.dimension_semantics<parallel>], iteration_bounds = array<i64: 2>, scalar_prefetch = 0 : i64, scratch_operands = 0 : i64, tpu.core_type = #tpu.core_type<tc>, window_params = [{transform_indices = @transform_0, window_bounds = array<i64: 128, 256>}, {pipeline_mode = #tpu.pipeline_mode<synchronous>, transform_indices = @transform_1, window_bounds = array<i64: 256, 256>}, {transform_indices = @transform_2, window_bounds = array<i64: 128, 256>}, {transform_indices = @transform_3, window_bounds = array<i64: 1, 1, 256>}, {transform_indices = @transform_4, window_bounds = array<i64: 1, 1, 256>}]} {
    %c0 = arith.constant 0 : index
    %c0_0 = arith.constant 0 : index
    %0 = vector.load %arg1[%c0, %c0_0] : memref<128x256xf32, #tpu.memory_space<vmem>>, vector<128x256xf32>
    %1 = arith.truncf %0 : vector<128x256xf32> to vector<128x256xbf16>
    %c0_1 = arith.constant 0 : index
    %c0_2 = arith.constant 0 : index
    %2 = vector.load %arg2[%c0_1, %c0_2] : memref<256x256xbf16, #tpu.memory_space<vmem>>, vector<256x256xbf16>
    %cst = arith.constant dense<0.000000e+00> : vector<128x256xf32>
    %3 = tpu.matmul %1, %2, %cst {dimension_numbers = #tpu.dot_dimension_numbers<[1], [0], [0], [1], [0, 0, 1, 1], [], []>} : vector<128x256xbf16>, vector<256x256xbf16>, vector<128x256xf32> -> vector<128x256xf32>
    %4 = tpu.iota {dimensions = array<i32: 0>} : vector<128x1xi32>
    %c128_i32 = arith.constant 128 : i32
    %5 = arith.muli %arg0, %c128_i32 : i32
    %6 = vector.broadcast %5 : i32 to vector<128x1xi32>
    %7 = arith.addi %4, %6 : vector<128x1xi32>
    %c200_i32 = arith.constant 200 : i32
    %8 = vector.broadcast %c200_i32 : i32 to vector<128x1xi32>
    %9 = arith.cmpi slt, %7, %8 : vector<128x1xi32>
    %cst_3 = arith.constant 0.000000e+00 : f32
    %10 = vector.shape_cast %9 : vector<128x1xi1> to vector<128x1xi1>
    %11 = vector.broadcast %10 : vector<128x1xi1> to vector<128x256xi1>
    %12 = vector.broadcast %cst_3 : f32 to vector<128x256xf32>
    %13 = arith.select %11, %3, %12 : vector<128x256xi1>, vector<128x256xf32>
    %14 = arith.truncf %13 : vector<128x256xf32> to vector<128x256xbf16>
    %c0_4 = arith.constant 0 : index
    %c0_5 = arith.constant 0 : index
    %15 = vector.load %arg3[%c0_4, %c0_5] : memref<128x256xbf16, #tpu.memory_space<vmem>>, vector<128x256xbf16>
    tpu.vector_store %arg3[%c0_4, %c0_5], %14 {strides = array<i32>} : memref<128x256xbf16, #tpu.memory_space<vmem>>, vector<128x256xbf16>,
    %cst_6 = arith.constant dense<0.000000e+00> : vector<256xf32>
    %16 = vector.multi_reduction <add>, %13, %cst_6 [0] : vector<128x256xf32> to vector<256xf32>
    %17 = vector.shape_cast %16 : vector<256xf32> to vector<1x256xf32>
    %18 = vector.shape_cast %17 : vector<1x256xf32> to vector<1x1x256xf32>
    %c0_7 = arith.constant 0 : index
    %c0_8 = arith.constant 0 : index
    %c0_9 = arith.constant 0 : index
    %19 = vector.load %arg4[%c0_7, %c0_8, %c0_9] : memref<1x1x256xf32, #tpu.memory_space<vmem>>, vector<1x1x256xf32>
    tpu.vector_store %arg4[%c0_7, %c0_8, %c0_9], %18 {strides = array<i32>} : memref<1x1x256xf32, #tpu.memory_space<vmem>>, vector<1x1x256xf32>,
    %20 = arith.mulf %13, %13 : vector<128x256xf32>
    %cst_10 = arith.constant dense<0.000000e+00> : vector<256xf32>
    %21 = vector.multi_reduction <add>, %20, %cst_10 [0] : vector<128x256xf32> to vector<256xf32>
    %22 = vector.shape_cast %21 : vector<256xf32> to vector<1x256xf32>
    %23 = vector.shape_cast %22 : vector<1x256xf32> to vector<1x1x256xf32>
    %c0_11 = arith.constant 0 : index
    %c0_12 = arith.constant 0 : index
    %c0_13 = arith.constant 0 : index
    %24 = vector.load %arg5[%c0_11, %c0_12, %c0_13] : memref<1x1x256xf32, #tpu.memory_space<vmem>>, vector<1x1x256xf32>
    tpu.vector_store %arg5[%c0_11, %c0_12, %c0_13], %23 {strides = array<i32>} : memref<1x1x256xf32, #tpu.memory_space<vmem>>, vector<1x1x256xf32>,
    return
  }
  func.func @transform_0(%arg0: i32) -> (i32, i32) {
    %c0_i32 = arith.constant 0 : i32
    %c0_i32_0 = arith.constant 0 : i32
    return %arg0, %c0_i32 : i32, i32
  }
  func.func @transform_1(%arg0: i32) -> (i32, i32) {
    %c0_i32 = arith.constant 0 : i32
    %c0_i32_0 = arith.constant 0 : i32
    %c0_i32_1 = arith.constant 0 : i32
    return %c0_i32, %c0_i32_0 : i32, i32
  }
  func.func @transform_2(%arg0: i32) -> (i32, i32) {
    %c0_i32 = arith.constant 0 : i32
    %c0_i32_0 = arith.constant 0 : i32
    return %arg0, %c0_i32 : i32, i32
  }
  func.func @transform_3(%arg0: i32) -> (i32, i32, i32) {
    %c0_i32 = arith.constant 0 : i32
    %c0_i32_0 = arith.constant 0 : i32
    %c0_i32_1 = arith.constant 0 : i32
    return %arg0, %c0_i32, %c0_i32_0 : i32, i32, i32
  }
  func.func @transform_4(%arg0: i32) -> (i32, i32, i32) {
    %c0_i32 = arith.constant 0 : i32
    %c0_i32_0 = arith.constant 0 : i32
    %c0_i32_1 = arith.constant 0 : i32
    return %arg0, %c0_i32, %c0_i32_0 : i32, i32, i32
  }
}

</mosaic_0001>

<bundles_post_ra>
// kernel: tpu_custom_call.1
= control target key start
LH: loop header
LB: loop body
LE: loop exit
PB: predicated region body
PF: predicated region fallthrough
CT: control target
= control target key end

     0   :  { %10 = vsyncpa [#allocation3], 0  ;;  %s2186_s0 = inlined_call_operand.hbm [shape: f32[200,256], index: 0, kind: input, shape index: {}]   ;;  %s2187_s1 = inlined_call_operand.hbm [shape: bf16[256,256], index: 1, kind: input, shape index: {}]   ;;  %s2188_s2 = inlined_call_operand.hbm [shape: bf16[200,256], index: 2, kind: output, shape index: {0}]   ;;  %s2189_s3 = inlined_call_operand.hbm [shape: f32[2,1,256], index: 3, kind: output, shape index: {1}]   ;;  %s2190_s4 = inlined_call_operand.hbm [shape: f32[2,1,256], index: 4, kind: output, shape index: {2}]  }
   0x1   :  { %12 = vsyncpa [#allocation3 + $0x1], 0 }
   0x2   :  { %13 = vsyncpa [#allocation6], 0 }
   0x3   :  { %14 = vsyncpa [#allocation4], 0 }
   0x4   :  { %16 = vsyncpa [#allocation4 + $0x1], 0 }
   0x5   :  { %17 = vsyncpa [#allocation9], 0 }
   0x6   :  { %19 = vsyncpa [#allocation9 + $0x1], 0  ;;  %s1682_s15 = smov 0   ;;  %s1684_s16 = smov 0  }
   0x7   :  { %s1686_s17 = smov 0   ;;  %s1688_s18 = smov 0  }
   0x8 LB: > { %s1703_s19 = sadd.s32 4294967295, %s1643_s18   ;;  %s1211_s20 = sadd.s32 4294967294, %s1643_s18   ;;  %s1643_s18 = sphi %s1688_s18, %s2207_s18   ;;  %s1639_s17 = sphi %s1686_s17, %s2206_s17   ;;  %s1635_s16 = sphi %s1684_s16, %s2205_s16   ;;  %s1631_s15 = sphi %s1682_s15, %s2204_s15  }
   0x9   : > { %s1707_s21 = sadd.s32 1, %s1643_s18   ;;  %s32_s22 = sadd.s32 1, %s1639_s17 }
   0xa   : > { %s29_s23 = ssub.s32 %s1643_s18, %s1707_s21  ;;  %p39_p0 = scmp.ne.s32.totalorder %s1639_s17, %s1635_s16 }
   0xb   : > { %p30_p1 = scmp.eq.s32.totalorder %s29_s23, 0  ;;  %p40_p2 = scmp.eq.s32.totalorder %s1643_s18, 0 }
   0xc   : > { %p45_p3 = scmp.ne.s32.totalorder %s1635_s16, %s1631_s15  ;;  %p46_p4 = scmp.eq.s32.totalorder %s1703_s19, 0 }
   0xd   : > { %s1719_s24 = scalar_select %p30_p1, %s1639_s17, %s32_s22  }
   0xe   : > { %p1721_p5 = por %p40_p2, %p39_p0  ;;  %p1727_p6 = por %p46_p4, %p45_p3 }
   0xf   : > { %p90_p7 = scmp.eq.s32.totalorder %s1703_s19, 1  ;;  %p96_p8 = scmp.eq.s32.totalorder %s1211_s20, 1 }
  0x10   : > { %s2195_s26 = scalar_select %p1727_p6, 1, 0 }
  0x11   : > { %p1212_p9 = scmp.ge.s32.totalorder %s1643_s18, 1  ;;  %p155_p10 = scmp.lt.s32.totalorder %s1643_s18, 3 }
  0x12   : > { %p1736_p11 = por %p90_p7, %p39_p0  ;;  %p1740_p12 = por %p96_p8, %p45_p3 }
  0x13   : > { %p1744_p13 = pnand %p1212_p9, %p155_p10  ;;  %s1645_s30 = smov [#allocation5]  }
  0x14   : > { %s2196_s27 = scalar_select %p1736_p11, 1, 0 }
  0x15   : > { %s2197_s28 = scalar_select %p1740_p12, 1, 0 }
  0x16   : > { %p1362_p1 = pneg %p1744_p13  ;;  %s167_s5 = sshll.u32 %s1645_s30, 4  ;;  %s168_s5 = int_to_ptr.vmem [resolvable:$true] %s167_s5 }
  0x17   : > { %s1478_s6 = scalar_lea.vmem %s168_s5, 4096  ;;  %p1486_p8 = scmp.lt.s32.totalorder %s168_s5, %s168_s5 }
  0x18   : > { %p1363_p2 = pnand %p1362_p1, %p46_p4  ;;  %p1479_p7 = scmp.ne.s32.totalorder %s168_s5, %s1478_s6 }
  0x19   : > { %p1487_p6 = scmp.lt.s32.totalorder %s1478_s6, %s1478_s6 }
  0x1a   : > { %p1469_p0 = pneg %p1363_p2 }
  0x1b   : > { %p1488_p12 = por %p1487_p6, %p1486_p8 }
  0x1c   : > { %p1481_p11 = pnand %p1479_p7, %p1469_p0 }
  0x1e   : > { %p1482_p3 = pneg %p1481_p11 }
  0x20   : > { %p1489_p9 = pnand %p1488_p12, %p1482_p3 }
  0x22   : > { %1492 = shalt.err (!%p1489_p9)
}
  0x23   : > { %s1646_s7 = smov 128   ;;  %s1647_s8 = smov 8  }
  0x24   : > { %1365 = dma.hbm_to_vmem [thread:$0]  (!%p1363_p2), %s2187_s1, 4096, %s168_s5, [#allocation6], %s1646_s7, %s1646_s7, %s1647_s8  }
  0x25   : > { %p2193_p10 = scmp.ge.s32.totalorder %s1643_s18, 2 }
  0x27   : > { %177 = sbr.rel (%p2193_p10) target bundleno = 76 (0x4c), region = 20 }
  0x2c   : > { %180 = sbr.rel (!%p1721_p5) target bundleno = 76 (0x4c), region = 24  ;;  %s181_s11 = sand.u32 (%p1721_p5), 1, %s1639_s17  }
  0x2d   : > { %s1216_s12 = sshll.u32 (%p1721_p5), %s1643_s18, 4  ;;  %s1215_s13 = sshll.u32 (%p1721_p5), %s181_s11, 8 }
  0x2e   : > { %s187_s14 = ssub.s32 (%p1721_p5), 25, %s1216_s12  ;;  %s1765_s30 = scalar_lea.sflag (%p1721_p5), [#allocation3], %s181_s11 }
  0x2f   : > { %p188_p6 = scmp.lt.s32.totalorder (%p1721_p5), %s187_s14, 16  ;;  %s185_s5 = scalar_lea.vmem (%p1721_p5), [#allocation2], %s1215_s13 }
  0x31   : > { %s2209_s14 = smov (!%p188_p6, %s187_s14), 16 }
  0x32   : > { %s1762_s22 = sshll.u32 %s2209_s14, 8 }
  0x33   : > { %s193_s23 = ssub.s32 4096, %s1762_s22 }
  0x34   : > { %194 = vsyncadd %s1765_s30, %s193_s23  ;;  %p1219_p5 = scmp.ne.s32.totalorder %s1762_s22, 0  ;;  %s1298_s25 = sshll.u32 %s1643_s18, 12 }
  0x35   : > { %s1773_s8 = scalar_lea.hbm %s2186_s0, %s1298_s25  ;;  %s200_s9 = sshll.u32 %s185_s5, 4  ;;  %s1775_s9 = int_to_ptr.vmem [resolvable:$true] %s200_s9 }
  0x36   : > { %s1493_s10 = scalar_lea.hbm %s1773_s8, %s1762_s22  ;;  %s1497_s13 = scalar_lea.hbm %s2186_s0, 6400 }
  0x37   : > { %p1494_p11 = scmp.ne.s32.totalorder %s1773_s8, %s1493_s10  ;;  %p1498_p2 = scmp.lt.s32.totalorder %s1773_s8, %s2186_s0 }
  0x38   : > { %p1499_p0 = scmp.lt.s32.totalorder %s1497_s13, %s1493_s10 }
  0x39   : > { %p1495_p12 = pnand %p1494_p11, %p1219_p5 }
  0x3a   : > { %p1500_p7 = por %p1499_p0, %p1498_p2 }
  0x3b   : > { %p1496_p1 = pneg %p1495_p12 }
  0x3d   : > { %p1501_p3 = pnand %p1500_p7, %p1496_p1 }
  0x3f   : > { %1504 = shalt.err (!%p1501_p3)
}
  0x40   : > { %s1505_s5 = scalar_lea.vmem %s1775_s9, %s1762_s22  ;;  %s1648_s25 = smov [#allocation2]  }
  0x41   : > { %p1506_p8 = scmp.ne.s32.totalorder %s1775_s9, %s1505_s5  ;;  %s1509_s6 = sshll.u32 %s1648_s25, 4  ;;  %s1510_s6 = int_to_ptr.vmem [resolvable:$false] %s1509_s6 }
  0x42   : > { %s1511_s7 = scalar_lea.vmem %s1510_s6, 8192  ;;  %p1512_p11 = scmp.lt.s32.totalorder %s1775_s9, %s1510_s6 }
  0x43   : > { %p1507_p9 = pnand %p1506_p8, %p1219_p5  ;;  %p1513_p12 = scmp.lt.s32.totalorder %s1511_s7, %s1505_s5 }
  0x45   : > { %p1508_p6 = pneg %p1507_p9  ;;  %p1514_p10 = por %p1513_p12, %p1512_p11 }
  0x47   : > { %p1515_p2 = pnand %p1514_p10, %p1508_p6 }
  0x49   : > { %1518 = shalt.err (!%p1515_p2)
}
  0x4a   : > { %s1649_s10 = smov 256   ;;  %s1650_s11 = smov 16  }
  0x4b   : > { %206 = dma.hbm_to_vmem [thread:$0]  (%p1219_p5), %s1773_s8, %s1762_s22, %s1775_s9, %s1765_s30, %s1649_s10, %s1649_s10, %s1650_s11  }
  0x4c PF: > { %212 = sbr.rel (%p1744_p13) target bundleno = 486 (0x1e6), region = 28  ;;  %s1804_s12 = sand.u32 (!%p1744_p13), 1, %s1635_s16  }
  0x4d   : > { %s1225_s13 = sshll.u32 (!%p1744_p13), %s1804_s12, 8  ;;  %s215_s14 = scalar_lea.sflag (!%p1744_p13), [#allocation3], %s1804_s12 }
  0x4e   : > { %s1808_s23 = scalar_lea.vmem (!%p1744_p13), [#allocation2], %s1225_s13  ;;  %p2199_p10 = scmp.ne.s32.totalorder (!%p1744_p13), %s2195_s26, 0 }
  0x51   : > { %1614 = dma.done.wait (%p2199_p10), %s215_s14, 4096  }
  0x52   : > { %1616 = vsyncadd (%p2199_p10), %s215_s14, 4294963200 }
  0x53   : > { %1618 = dma.done.wait (%p46_p4), [#allocation6], 4096  }
  0x54   : > { %1620 = vsyncadd (%p46_p4), [#allocation6], 4294963200  ;;  %v1419_v0 = vld [vmem:[#allocation5 + $0x74] ss:$8 sps:$4 sm:$0xff]   ;;  %v1421_v1 = vld [vmem:[#allocation5 + $0x70] ss:$8 sps:$4 sm:$0xff]  }
  0x55   : > { %509 = vmatprep.subr.bf16.mxu0 %v1419_v0  ;;  %v1422_v2 = vld [vmem:[#allocation5 + $0x64] ss:$8 sps:$4 sm:$0xff]   ;;  %1320 = vmatprep.subr.bf16.mxu1 %v1419_v0  ;;  %v1424_v3 = vld [vmem:[#allocation5 + $0x60] ss:$8 sps:$4 sm:$0xff]   ;;  %v1425_v4 = vld [vmem:[#allocation5 + $0x54] ss:$8 sps:$4 sm:$0xff]  }
  0x56   : > { %510 = vmatpush1.bf16.msra.mxu0 %v1421_v1  ;;  %1336 = vmatpush1.bf16.msra.mxu1 %v1421_v1  ;;  %v1427_v5 = vld [vmem:[#allocation5 + $0x50] ss:$8 sps:$4 sm:$0xff]   ;;  %v1428_v6 = vld [vmem:[#allocation5 + $0x44] ss:$8 sps:$4 sm:$0xff]   ;;  %v1430_v7 = vld [vmem:[#allocation5 + $0x40] ss:$8 sps:$4 sm:$0xff]  }
  0x57   : > { %511 = vmatprep.subr.bf16.mxu0 %v1422_v2  ;;  %1321 = vmatprep.subr.bf16.mxu1 %v1422_v2  ;;  %v1431_v8 = vld [vmem:[#allocation5 + $0x34] ss:$8 sps:$4 sm:$0xff]   ;;  %v1433_v9 = vld [vmem:[#allocation5 + $0x30] ss:$8 sps:$4 sm:$0xff]   ;;  %v1434_v10 = vld [vmem:[#allocation5 + $0x24] ss:$8 sps:$4 sm:$0xff]  }
  0x58   : > { %v1436_v11 = vld [vmem:[#allocation5 + $0x20] ss:$8 sps:$4 sm:$0xff]   ;;  %v1437_v12 = vld [vmem:[#allocation5 + $0x14] ss:$8 sps:$4 sm:$0xff]   ;;  %v1439_v16 = vld [vmem:[#allocation5 + $0x10] ss:$8 sps:$4 sm:$0xff]  }
  0x59   : > { %v270_v13 = vld [vmem:[%s1808_s23 + $0x8] sm:$0xff]  ;;  %v272_v14 = vld [vmem:[%s1808_s23 + $0x18] sm:$0xff]  ;;  %v269_v38 = vld [vmem:[%s1808_s23] sm:$0xff]  ;;  %s1012_s26 = sand.u32 1, %s1703_s19   ;;  %s1262_s29 = sshll.u32 %s1703_s19, 7 }
  0x5a   : > { %512 = vmatpush1.bf16.msra.mxu0 %v1424_v3  ;;  %1337 = vmatpush1.bf16.msra.mxu1 %v1424_v3  ;;  %v302_v15 = vpack.c.bf16 %v272_v14, %v270_v13  ;;  %v1440_v17 = vld [vmem:[#allocation5 + $0x4] ss:$8 sps:$4 sm:$0xff]   ;;  %v288_v19 = vld [vmem:[%s1808_s23 + $0x98] sm:$0xff]  ;;  %v1442_v21 = vld [vmem:[#allocation5] ss:$8 sps:$4 sm:$0xff]   ;;  %s1227_s22 = sshll.u32 %s1804_s12, 7 }
  0x5b   : > { %513 = vmatprep.subr.bf16.mxu0 %v1425_v4  ;;  %1322 = vmatprep.subr.bf16.mxu1 %v1425_v4  ;;  %v286_v18 = vld [vmem:[%s1808_s23 + $0x88] sm:$0xff]  ;;  %v1443_v22 = vld [vmem:[#allocation5 + $0xf4] ss:$8 sps:$4 sm:$0xff]   ;;  %v1445_v23 = vld [vmem:[#allocation5 + $0xf0] ss:$8 sps:$4 sm:$0xff]   ;;  %s1889_s30 = scalar_lea.vmem [#allocation7], %s1227_s22 }
  0x5c   : > { %541 = vmatprep.mubr.bf16.mxu0 %v302_v15  ;;  %v310_v20 = vpack.c.bf16 %v288_v19, %v286_v18  ;;  %v1446_v24 = vld [vmem:[#allocation5 + $0xe4] ss:$8 sps:$4 sm:$0xff]   ;;  %v1448_v25 = vld [vmem:[#allocation5 + $0xe0] ss:$8 sps:$4 sm:$0xff]   ;;  %v1449_v26 = vld [vmem:[#allocation5 + $0xd4] ss:$8 sps:$4 sm:$0xff]   ;;  %v1856_v19 = vstv %s1262_s29 }
  0x5d   : > { %v1451_v27 = vld [vmem:[#allocation5 + $0xd0] ss:$8 sps:$4 sm:$0xff]   ;;  %v1452_v28 = vld [vmem:[#allocation5 + $0xc4] ss:$8 sps:$4 sm:$0xff]   ;;  %v1454_v29 = vld [vmem:[#allocation5 + $0xc0] ss:$8 sps:$4 sm:$0xff]  }
  0x5e   : > { %514 = vmatpush1.bf16.msra.mxu0 %v1427_v5  ;;  %1338 = vmatpush1.bf16.msra.mxu1 %v1427_v5  ;;  %v1455_v30 = vld [vmem:[#allocation5 + $0xb4] ss:$8 sps:$4 sm:$0xff]   ;;  %v1457_v31 = vld [vmem:[#allocation5 + $0xb0] ss:$8 sps:$4 sm:$0xff]   ;;  %v1458_v32 = vld [vmem:[#allocation5 + $0xa4] ss:$8 sps:$4 sm:$0xff]  }
  0x5f   : > { %515 = vmatprep.subr.bf16.mxu0 %v1428_v6  ;;  %1323 = vmatprep.subr.bf16.mxu1 %v1428_v6  ;;  %v1460_v33 = vld [vmem:[#allocation5 + $0xa0] ss:$8 sps:$4 sm:$0xff]   ;;  %v1461_v34 = vld [vmem:[#allocation5 + $0x94] ss:$8 sps:$4 sm:$0xff]   ;;  %v1463_v35 = vld [vmem:[#allocation5 + $0x90] ss:$8 sps:$4 sm:$0xff]  }
  0x60   : > { %581 = vmatprep.mubr.bf16.mxu1 %v310_v20  ;;  %v1464_v36 = vld [vmem:[#allocation5 + $0x84] ss:$8 sps:$4 sm:$0xff]   ;;  %v1466_v37 = vld [vmem:[#allocation5 + $0x80] ss:$8 sps:$4 sm:$0xff]   ;;  %v271_v39 = vld [vmem:[%s1808_s23 + $0x10] sm:$0xff]  ;;  %s1228_s8 = sshll.u32 %s1804_s12, 1 }
  0x61   : > { %v274_v40 = vld [vmem:[%s1808_s23 + $0x28] sm:$0xff]  ;;  %v285_v41 = vld [vmem:[%s1808_s23 + $0x80] sm:$0xff]  ;;  %v287_v42 = vld [vmem:[%s1808_s23 + $0x90] sm:$0xff]  ;;  %v301_v46 = vpack.c.bf16 %v271_v39, %v269_v38  ;;  %s2073_s9 = scalar_lea.vmem [#allocation8], %s1228_s8  ;;  %s2076_s5 = scalar_lea.vmem [#allocation10], %s1228_s8 }
  0x62   : > { %516 = vmatpush1.bf16.msra.mxu0 %v1430_v7  ;;  %1339 = vmatpush1.bf16.msra.mxu1 %v1430_v7  ;;  %v276_v43 = vld [vmem:[%s1808_s23 + $0x38] sm:$0xff]  ;;  %v290_v44 = vld [vmem:[%s1808_s23 + $0xa8] sm:$0xff]  ;;  %v309_v47 = vpack.c.bf16 %v287_v42, %v285_v41  ;;  %v273_v50 = vld [vmem:[%s1808_s23 + $0x20] sm:$0xff]  ;;  %s1008_s25 = scalar_lea.sflag [#allocation4], %s1804_s12  ;;  %s2082_s6 = scalar_lea.sflag [#allocation9], %s1012_s26 }
  0x63   : > { %517 = vmatprep.subr.bf16.mxu0 %v1431_v8  ;;  %1324 = vmatprep.subr.bf16.mxu1 %v1431_v8  ;;  %v292_v45 = vld [vmem:[%s1808_s23 + $0xb8] sm:$0xff]  ;;  %v304_v48 = vpack.c.bf16 %v276_v43, %v274_v40  ;;  %v275_v51 = vld [vmem:[%s1808_s23 + $0x30] sm:$0xff]  ;;  %v278_v52 = vld [vmem:[%s1808_s23 + $0x48] sm:$0xff]  ;;  %p2200_p4 = scmp.ne.s32.totalorder %s2196_s27, 0 }
  0x64   : > { %v312_v49 = vpack.c.bf16 %v292_v45, %v290_v44  ;;  %v289_v53 = vld [vmem:[%s1808_s23 + $0xa0] sm:$0xff]  ;;  %v291_v54 = vld [vmem:[%s1808_s23 + $0xb0] sm:$0xff]  ;;  %v280_v55 = vld [vmem:[%s1808_s23 + $0x58] sm:$0xff]  ;;  %v303_v58 = vpack.c.bf16 %v275_v51, %v273_v50  ;;  %s1282_s7 = sshll.u32 (%p2200_p4), %s1703_s19, 4 }
  0x65   : > { %v294_v56 = vld [vmem:[%s1808_s23 + $0xc8] sm:$0xff]  ;;  %v296_v57 = vld [vmem:[%s1808_s23 + $0xd8] sm:$0xff]  ;;  %v311_v59 = vpack.c.bf16 %v291_v54, %v289_v53  ;;  %v306_v60 = vpack.c.bf16 %v280_v55, %v278_v52  ;;  %v277_v62 = vld [vmem:[%s1808_s23 + $0x40] sm:$0xff]  ;;  %s1026_s10 = ssub.s32 (%p2200_p4), 25, %s1282_s7 }
  0x66   : > { %518 = vmatpush1.bf16.msra.mxu0 %v1433_v9  ;;  %1340 = vmatpush1.bf16.msra.mxu1 %v1433_v9  ;;  %v314_v61 = vpack.c.bf16 %v296_v57, %v294_v56  ;;  %v279_v63 = vld [vmem:[%s1808_s23 + $0x50] sm:$0xff]  ;;  %v282_v0 = vld [vmem:[%s1808_s23 + $0x68] sm:$0xff]  ;;  %v293_v1 = vld [vmem:[%s1808_s23 + $0xc0] sm:$0xff]  ;;  %p1027_p13 = scmp.lt.s32.totalorder (%p2200_p4), %s1026_s10, 16 }
  0x67   : > { %519 = vmatprep.subr.bf16.mxu0 %v1434_v10  ;;  %1325 = vmatprep.subr.bf16.mxu1 %v1434_v10  ;;  %v295_v2 = vld [vmem:[%s1808_s23 + $0xd0] sm:$0xff]  ;;  %v284_v3 = vld [vmem:[%s1808_s23 + $0x78] sm:$0xff]  ;;  %v298_v4 = vld [vmem:[%s1808_s23 + $0xe8] sm:$0xff]  ;;  %v305_v6 = vpack.c.bf16 %v279_v63, %v277_v62 }
  0x68   : > { %v300_v5 = vld [vmem:[%s1808_s23 + $0xf8] sm:$0xff]  ;;  %v313_v7 = vpack.c.bf16 %v295_v2, %v293_v1  ;;  %v308_v8 = vpack.c.bf16 %v284_v3, %v282_v0  ;;  %v281_v10 = vld [vmem:[%s1808_s23 + $0x60] sm:$0xff]  ;;  %v299_v13 = vld [vmem:[%s1808_s23 + $0xf0] sm:$0xff] }
  0x69   : > { %v316_v9 = vpack.c.bf16 %v300_v5, %v298_v4 }
  0x6a   : > { %520 = vmatpush1.bf16.msra.mxu0 %v1436_v11  ;;  %1341 = vmatpush1.bf16.msra.mxu1 %v1436_v11  ;;  %v283_v11 = vld [vmem:[%s1808_s23 + $0x70] sm:$0xff] }
  0x6b   : > { %521 = vmatprep.subr.bf16.mxu0 %v1437_v12  ;;  %1326 = vmatprep.subr.bf16.mxu1 %v1437_v12  ;;  %v297_v12 = vld [vmem:[%s1808_s23 + $0xe0] sm:$0xff]  ;;  %v307_v14 = vpack.c.bf16 %v283_v11, %v281_v10 }
  0x6c   : > { %v315_v15 = vpack.c.bf16 %v299_v13, %v297_v12 }
  0x6e   : > { %522 = vmatpush1.bf16.msra.mxu0 %v1439_v16  ;;  %1342 = vmatpush1.bf16.msra.mxu1 %v1439_v16  ;;  %v622_v16 = vlaneseq }
  0x6f   : > { %523 = vmatprep.subr.bf16.mxu0 %v1440_v17  ;;  %1327 = vmatprep.subr.bf16.mxu1 %v1440_v17 }
  0x70   : > { %v1852_v17 = vshrl.u32 %v622_v16, 7 }
  0x72   : > { %524 = vmatpush1.bf16.msra.mxu0 %v1442_v21  ;;  %1343 = vmatpush1.bf16.msra.mxu1 %v1442_v21  ;;  %v631_v18 = vadd.s32 64, %v1852_v17  ;;  %v624_v20 = vadd.s32 8, %v1852_v17  ;;  %v627_v44 = vadd.s32 32, %v1852_v17  ;;  %v628_v45 = vadd.s32 40, %v1852_v17 }
  0x73   : > { %525 = vmatprep.subr.bf16.mxu0 %v1443_v22  ;;  %1328 = vmatprep.subr.bf16.mxu1 %v1443_v22  ;;  %v632_v22 = vadd.s32 72, %v1852_v17  ;;  %v635_v51 = vadd.s32 96, %v1852_v17  ;;  %v636_v52 = vadd.s32 104, %v1852_v17  ;;  %v630_v0 = vadd.s32 56, %v1852_v17 }
  0x74   : > { %v649_v21 = vadd.s32 %v1856_v19, %v631_v18  ;;  %v637_v1 = vadd.s32 112, %v1852_v17  ;;  %v638_v10 = vadd.s32 120, %v1852_v17 }
  0x75   : > { %v653_v5 = vadd.s32 %v1856_v19, %v635_v51 }
  0x76   : > { %526 = vmatpush2.bf16.msra.mxu0 %v1445_v23  ;;  %1344 = vmatpush2.bf16.msra.mxu1 %v1445_v23  ;;  %v641_v23 = vadd.s32 %v1856_v19, %v1852_v17  ;;  %vm665_vm0 = vcmp.lt.s32.totalorder %v649_v21, 200  ;;  %v1941_v18 = vadd.s32 %v1856_v19, %v637_v1 }
  0x77   : > { %527 = vmatprep.subr.bf16.mxu0 %v1446_v24  ;;  %1329 = vmatprep.subr.bf16.mxu1 %v1446_v24  ;;  %v625_v24 = vadd.s32 16, %v1852_v17  ;;  %vm669_vm11 = vcmp.lt.s32.totalorder %v653_v5, 200 }
  0x78   : > { %vm657_vm1 = vcmp.lt.s32.totalorder %v641_v23, 200  ;;  %vm671_vm13 = vcmp.lt.s32.totalorder %v1941_v18, 200 }
  0x7a   : > { %528 = vmatpush2.bf16.msra.mxu0 %v1448_v25  ;;  %1345 = vmatpush2.bf16.msra.mxu1 %v1448_v25  ;;  %v642_v25 = vadd.s32 %v1856_v19, %v624_v20 }
  0x7b   : > { %529 = vmatprep.subr.bf16.mxu0 %v1449_v26  ;;  %1330 = vmatprep.subr.bf16.mxu1 %v1449_v26  ;;  %v650_v26 = vadd.s32 %v1856_v19, %v632_v22 }
  0x7c   : > { %vm658_vm2 = vcmp.lt.s32.totalorder %v642_v25, 200 }
  0x7d   : > { %vm666_vm3 = vcmp.lt.s32.totalorder %v650_v26, 200 }
  0x7e   : > { %530 = vmatpush2.bf16.msra.mxu0 %v1451_v27  ;;  %1346 = vmatpush2.bf16.msra.mxu1 %v1451_v27  ;;  %v633_v27 = vadd.s32 80, %v1852_v17 }
  0x7f   : > { %531 = vmatprep.subr.bf16.mxu0 %v1452_v28  ;;  %1331 = vmatprep.subr.bf16.mxu1 %v1452_v28 }
  0x80   : > { %v651_v39 = vadd.s32 %v1856_v19, %v633_v27  ;;  %v1956_v27 = vadd.s32 %v1856_v19, %v638_v10 }
  0x82   : > { %532 = vmatpush2.bf16.msra.mxu0 %v1454_v29  ;;  %1347 = vmatpush2.bf16.msra.mxu1 %v1454_v29  ;;  %vm667_vm5 = vcmp.lt.s32.totalorder %v651_v39, 200  ;;  %vm672_vm15 = vcmp.lt.s32.totalorder %v1956_v27, 200 }
  0x83   : > { %533 = vmatprep.subr.bf16.mxu0 %v1455_v30  ;;  %1332 = vmatprep.subr.bf16.mxu1 %v1455_v30  ;;  %v643_v30 = vadd.s32 %v1856_v19, %v625_v24 }
  0x85   : > { %vm659_vm4 = vcmp.lt.s32.totalorder %v643_v30, 200 }
  0x86   : > { %534 = vmatpush2.bf16.msra.mxu0 %v1457_v31  ;;  %1348 = vmatpush2.bf16.msra.mxu1 %v1457_v31 }
  0x87   : > { %535 = vmatprep.subr.bf16.mxu0 %v1458_v32  ;;  %1333 = vmatprep.subr.bf16.mxu1 %v1458_v32 }
  0x8a   : > { %536 = vmatpush2.bf16.msra.mxu0 %v1460_v33  ;;  %1349 = vmatpush2.bf16.msra.mxu1 %v1460_v33  ;;  %v626_v33 = vadd.s32 24, %v1852_v17 }
  0x8b   : > { %537 = vmatprep.subr.bf16.mxu0 %v1461_v34  ;;  %1334 = vmatprep.subr.bf16.mxu1 %v1461_v34 }
  0x8e   : > { %538 = vmatpush2.bf16.msra.mxu0 %v1463_v35  ;;  %1350 = vmatpush2.bf16.msra.mxu1 %v1463_v35  ;;  %v634_v35 = vadd.s32 88, %v1852_v17 }
  0x8f   : > { %539 = vmatprep.subr.bf16.mxu0 %v1464_v36  ;;  %1335 = vmatprep.subr.bf16.mxu1 %v1464_v36 }
  0x90   : > { %v652_v50 = vadd.s32 %v1856_v19, %v634_v35 }
  0x92   : > { %540 = vmatpush2.bf16.msra.mxu0 %v1466_v37  ;;  %1351 = vmatpush2.bf16.msra.mxu1 %v1466_v37  ;;  %vm668_vm6 = vcmp.lt.s32.totalorder %v652_v50, 200 }
  0x95   : > { %542 = vmatmul.mubr.bf16.vlgmr.msra.gmra.mxu0 %v301_v46  ;;  %582 = vmatmul.mubr.bf16.vlgmr.msra.gmra.mxu1 %v309_v47  ;;  %v629_v46 = vadd.s32 48, %v1852_v17 }
  0x96   : > { %551 = vmatprep.mubr.bf16.mxu0 %v304_v48  ;;  %591 = vmatprep.mubr.bf16.mxu1 %v312_v49 }
  0x97   : > { %v1915_v63 = vadd.s32 %v1856_v19, %v629_v46 }
  0x99   : > { %vm663_vm10 = vcmp.lt.s32.totalorder %v1915_v63, 200 }
  0x9d   : > { %552 = vmatmul.mubr.bf16.gmra.mxu0 %v303_v58  ;;  %592 = vmatmul.mubr.bf16.gmra.mxu1 %v311_v59  ;;  %v644_v58 = vadd.s32 %v1856_v19, %v626_v33  ;;  %v645_v59 = vadd.s32 %v1856_v19, %v627_v44 }
  0x9e   : > { %561 = vmatprep.mubr.bf16.mxu0 %v306_v60  ;;  %601 = vmatprep.mubr.bf16.mxu1 %v314_v61  ;;  %v1910_v61 = vadd.s32 %v1856_v19, %v628_v45 }
  0x9f   : > { %vm660_vm7 = vcmp.lt.s32.totalorder %v644_v58, 200  ;;  %vm661_vm8 = vcmp.lt.s32.totalorder %v645_v59, 200 }
  0xa0   : > { %vm662_vm9 = vcmp.lt.s32.totalorder %v1910_v61, 200 }
  0xa5   : > { %562 = vmatmul.mubr.bf16.gmra.mxu0 %v305_v6  ;;  %602 = vmatmul.mubr.bf16.gmra.mxu1 %v313_v7  ;;  %v1925_v6 = vadd.s32 %v1856_v19, %v636_v52 }
  0xa6   : > { %571 = vmatprep.mubr.bf16.mxu0 %v308_v8  ;;  %611 = vmatprep.mubr.bf16.mxu1 %v316_v9 }
  0xa7   : > { %vm670_vm12 = vcmp.lt.s32.totalorder %v1925_v6, 200 }
  0xad   : > { %572 = vmatmul.mubr.bf16.gmra.mxu0 %v307_v14  ;;  %612 = vmatmul.mubr.bf16.gmra.mxu1 %v315_v15  ;;  %v1938_v15 = vadd.s32 %v1856_v19, %v630_v0 }
  0xaf   : > { %vm664_vm14 = vcmp.lt.s32.totalorder %v1938_v15, 200 }
 0x155   : > { %v543_v28 = vpop.f32.mrf.mxu0  ;;  %v583_v29 = vpop.f32.mrf.mxu1 }
 0x156   : > { %v1870_v31 = vsel %vm665_vm0, %v583_v29, 0.0  ;;  %v1874_v36 = vsel %vm657_vm1, %v543_v28, 0.0 }
 0x157   : > { %v545_v32 = vpop.f32.mrf.mxu0  ;;  %v585_v34 = vpop.f32.mrf.mxu1  ;;  %v914_v28 = vmul.f32 %v1874_v36, %v1874_v36 }
 0x158   : > { %v1876_v37 = vsel %vm657_vm1, %v545_v32, 0.0  ;;  %v1879_v38 = vsel %vm665_vm0, %v585_v34, 0.0  ;;  %vm911_vm0 = vcmp.lt.s32.totalorder %v622_v16, 256 }
 0x159   : > { %v1299_v40 = vpack.c.bf16 %v1876_v37, %v1874_v36  ;;  %v547_v41 = vpop.f32.mrf.mxu0  ;;  %v1307_v42 = vpack.c.bf16 %v1879_v38, %v1870_v31  ;;  %v587_v43 = vpop.f32.mrf.mxu1  ;;  %v915_v35 = vmul.f32 %v1876_v37, %v1876_v37  ;;  %v931_v27 = vmul.f32 %v1879_v38, %v1879_v38 }
 0x15a   : > { %v1894_v48 = vsel %vm666_vm3, %v587_v43, 0.0  ;;  %v707_v53 = vsel %vm658_vm2, %v547_v41, 0.0 }
 0x15b   : > { %833 = vst [vmem:[%s1889_s30] sm:$0xff] %v1299_v40  ;;  %v549_v47 = vpop.f32.mrf.mxu0  ;;  %841 = vst [vmem:[%s1889_s30 + $0x40] sm:$0xff] %v1307_v42  ;;  %v589_v49 = vpop.f32.mrf.mxu1  ;;  %v916_v20 = vmul.f32 %v707_v53, %v707_v53  ;;  %v849_v39 = vadd.f32 %v707_v53, %v1874_v36 }
 0x15c   : > { %v1901_v54 = vsel %vm658_vm2, %v549_v47, 0.0  ;;  %v1904_v55 = vsel %vm666_vm3, %v589_v49, 0.0 }
 0x15d   : > { %v1300_v56 = vpack.c.bf16 %v1901_v54, %v707_v53  ;;  %v553_v57 = vpop.f32.mrf.mxu0  ;;  %v593_v60 = vpop.f32.mrf.mxu1  ;;  %v1308_v62 = vpack.c.bf16 %v1904_v55, %v1894_v48  ;;  %v917_v29 = vmul.f32 %v1901_v54, %v1901_v54  ;;  %v946_v40 = vadd.f32 %v916_v20, %v914_v28 }
 0x15e   : > { %v1921_v3 = vsel %vm667_vm5, %v593_v60, 0.0  ;;  %v709_v7 = vsel %vm659_vm4, %v553_v57, 0.0  ;;  %v870_v36 = vadd.f32 %v1901_v54, %v1876_v37 }
 0x15f   : > { %834 = vst [vmem:[%s1889_s30 + $0x8] sm:$0xff] %v1300_v56  ;;  %v555_v2 = vpop.f32.mrf.mxu0  ;;  %v595_v4 = vpop.f32.mrf.mxu1  ;;  %842 = vst [vmem:[%s1889_s30 + $0x48] sm:$0xff] %v1308_v62  ;;  %v918_v30 = vmul.f32 %v709_v7, %v709_v7  ;;  %v967_v50 = vadd.f32 %v917_v29, %v915_v35  ;;  %v850_v51 = vadd.f32 %v849_v39, %v709_v7 }
 0x160   : > { %v710_v8 = vsel %vm659_vm4, %v555_v2, 0.0  ;;  %v1931_v9 = vsel %vm667_vm5, %v595_v4, 0.0 }
 0x161   : > { %v1301_v11 = vpack.c.bf16 %v710_v8, %v709_v7  ;;  %v557_v12 = vpop.f32.mrf.mxu0  ;;  %v597_v13 = vpop.f32.mrf.mxu1  ;;  %v1309_v14 = vpack.c.bf16 %v1931_v9, %v1921_v3  ;;  %v919_v41 = vmul.f32 %v710_v8, %v710_v8  ;;  %v947_v52 = vadd.f32 %v946_v40, %v918_v30 }
 0x162   : > { %v1945_v22 = vsel %vm668_vm6, %v597_v13, 0.0  ;;  %v711_v24 = vsel %vm660_vm7, %v557_v12, 0.0  ;;  %v871_v59 = vadd.f32 %v870_v36, %v710_v8 }
 0x163   : > { %835 = vst [vmem:[%s1889_s30 + $0x10] sm:$0xff] %v1301_v11  ;;  %v559_v21 = vpop.f32.mrf.mxu0  ;;  %v599_v23 = vpop.f32.mrf.mxu1  ;;  %843 = vst [vmem:[%s1889_s30 + $0x50] sm:$0xff] %v1309_v14  ;;  %v920_v46 = vmul.f32 %v711_v24, %v711_v24  ;;  %v968_v62 = vadd.f32 %v967_v50, %v919_v41  ;;  %v851_v0 = vadd.f32 %v850_v51, %v711_v24 }
 0x164   : > { %v712_v25 = vsel %vm660_vm7, %v559_v21, 0.0  ;;  %v1953_v26 = vsel %vm668_vm6, %v599_v23, 0.0 }
 0x165   : > { %v1302_v32 = vpack.c.bf16 %v712_v25, %v711_v24  ;;  %v563_v33 = vpop.f32.mrf.mxu0  ;;  %v603_v34 = vpop.f32.mrf.mxu1  ;;  %v1310_v19 = vpack.c.bf16 %v1953_v26, %v1945_v22  ;;  %v921_v58 = vmul.f32 %v712_v25, %v712_v25  ;;  %v948_v5 = vadd.f32 %v947_v52, %v920_v46 }
 0x166   : > { %v713_v42 = vsel %vm661_vm8, %v563_v33, 0.0  ;;  %v1971_v44 = vsel %vm669_vm11, %v603_v34, 0.0  ;;  %v872_v8 = vadd.f32 %v871_v59, %v712_v25 }
 0x167   : > { %836 = vst [vmem:[%s1889_s30 + $0x18] sm:$0xff] %v1302_v32  ;;  %v565_v43 = vpop.f32.mrf.mxu0  ;;  %v605_v45 = vpop.f32.mrf.mxu1  ;;  %844 = vst [vmem:[%s1889_s30 + $0x58] sm:$0xff] %v1310_v19  ;;  %v922_v60 = vmul.f32 %v713_v42, %v713_v42  ;;  %v852_v12 = vadd.f32 %v851_v0, %v713_v42  ;;  %v969_v23 = vadd.f32 %v968_v62, %v921_v58 }
 0x168   : > { %v714_v47 = vsel %vm661_vm8, %v565_v43, 0.0  ;;  %v1979_v49 = vsel %vm669_vm11, %v605_v45, 0.0  ;;  %v930_v58 = vmul.f32 %v1870_v31, %v1870_v31 }
 0x169   : > { %v1303_v53 = vpack.c.bf16 %v714_v47, %v713_v42  ;;  %v567_v56 = vpop.f32.mrf.mxu0  ;;  %v607_v57 = vpop.f32.mrf.mxu1  ;;  %v1311_v54 = vpack.c.bf16 %v1979_v49, %v1971_v44  ;;  %v923_v13 = vmul.f32 %v714_v47, %v714_v47  ;;  %v949_v24 = vadd.f32 %v948_v5, %v922_v60 }
 0x16a   : > { %v715_v37 = vsel %vm662_vm9, %v567_v56, 0.0  ;;  %v1989_v2 = vsel %vm670_vm12, %v607_v57, 0.0  ;;  %v873_v29 = vadd.f32 %v872_v8, %v714_v47 }
 0x16b   : > { %837 = vst [vmem:[%s1889_s30 + $0x20] sm:$0xff] %v1303_v53  ;;  %v569_v1 = vpop.f32.mrf.mxu0  ;;  %v609_v4 = vpop.f32.mrf.mxu1  ;;  %v924_v7 = vmul.f32 %v715_v37, %v715_v37  ;;  %845 = vst [vmem:[%s1889_s30 + $0x60] sm:$0xff] %v1311_v54  ;;  %v853_v30 = vadd.f32 %v852_v12, %v715_v37  ;;  %v970_v40 = vadd.f32 %v969_v23, %v923_v13 }
 0x16c   : > { %v716_v10 = vsel %vm662_vm9, %v569_v1, 0.0  ;;  %v1996_v11 = vsel %vm670_vm12, %v609_v4, 0.0 }
 0x16d   : > { %v1304_v14 = vpack.c.bf16 %v716_v10, %v715_v37  ;;  %v573_v20 = vpop.f32.mrf.mxu0  ;;  %v613_v21 = vpop.f32.mrf.mxu1  ;;  %v1312_v61 = vpack.c.bf16 %v1996_v11, %v1989_v2  ;;  %v950_v34 = vadd.f32 %v949_v24, %v924_v7  ;;  %v925_v35 = vmul.f32 %v716_v10, %v716_v10 }
 0x16e   : > { %v717_v28 = vsel %vm663_vm10, %v573_v20, 0.0  ;;  %v2005_v25 = vsel %vm671_vm13, %v613_v21, 0.0  ;;  %v874_v41 = vadd.f32 %v873_v29, %v716_v10  ;;  %v932_v10 = vmul.f32 %v1894_v48, %v1894_v48 }
 0x16f   : > { %838 = vst [vmem:[%s1889_s30 + $0x28] sm:$0xff] %v1304_v14  ;;  %v926_v6 = vmul.f32 %v717_v28, %v717_v28  ;;  %v575_v32 = vpop.f32.mrf.mxu0  ;;  %v615_v33 = vpop.f32.mrf.mxu1  ;;  %846 = vst [vmem:[%s1889_s30 + $0x68] sm:$0xff] %v1312_v61  ;;  %v854_v42 = vadd.f32 %v853_v30, %v717_v28  ;;  %v971_v60 = vadd.f32 %v970_v40, %v925_v35 }
 0x170   : > { %v718_v39 = vsel %vm663_vm10, %v575_v32, 0.0  ;;  %v2012_v19 = vsel %vm671_vm13, %v615_v33, 0.0  ;;  %v936_v24 = vmul.f32 %v1945_v22, %v1945_v22  ;;  %v935_v29 = vmul.f32 %v1931_v9, %v1931_v9 }
 0x171   : > { %v1305_v43 = vpack.c.bf16 %v718_v39, %v717_v28  ;;  %v577_v45 = vpop.f32.mrf.mxu0  ;;  %v617_v36 = vpop.f32.mrf.mxu1  ;;  %v951_v46 = vadd.f32 %v950_v34, %v926_v6  ;;  %v927_v47 = vmul.f32 %v718_v39, %v718_v39  ;;  %v1313_v63 = vpack.c.bf16 %v2012_v19, %v2005_v25 }
 0x172   : > { %v719_v50 = vsel %vm664_vm14, %v577_v45, 0.0  ;;  %v875_v51 = vadd.f32 %v874_v41, %v718_v39  ;;  %v735_v56 = vsel %vm672_vm15, %v617_v36, 0.0  ;;  %v938_v6 = vmul.f32 %v1971_v44, %v1971_v44 }
 0x173   : > { %839 = vst [vmem:[%s1889_s30 + $0x30] sm:$0xff] %v1305_v43  ;;  %v855_v18 = vadd.f32 %v854_v42, %v719_v50  ;;  %v928_v52 = vmul.f32 %v719_v50, %v719_v50  ;;  %v579_v53 = vpop.f32.mrf.mxu0  ;;  %v619_v57 = vpop.f32.mrf.mxu1  ;;  %847 = vst [vmem:[%s1889_s30 + $0x70] sm:$0xff] %v1313_v63  ;;  %v972_v4 = vadd.f32 %v971_v60, %v927_v47 }
 0x174   : > { %v720_v37 = vsel %vm664_vm14, %v579_v53, 0.0  ;;  %v736_v54 = vsel %vm672_vm15, %v619_v57, 0.0  ;;  %v937_v33 = vmul.f32 %v1953_v26, %v1953_v26  ;;  %v940_v35 = vmul.f32 %v1989_v2, %v1989_v2 }
 0x175   : > { %v856_v59 = vadd.f32 %v855_v18, %v1870_v31  ;;  %v952_v62 = vadd.f32 %v951_v46, %v928_v52  ;;  %v1306_v0 = vpack.c.bf16 %v720_v37, %v719_v50  ;;  %v876_v1 = vadd.f32 %v875_v51, %v720_v37 }
 0x176   : > { %v929_v5 = vmul.f32 %v720_v37, %v720_v37  ;;  %v1314_v7 = vpack.c.bf16 %v736_v54, %v735_v56  ;;  %v934_v31 = vmul.f32 %v1921_v3, %v1921_v3  ;;  %v939_v40 = vmul.f32 %v1979_v49, %v1979_v49 }
 0x177   : > { %v857_v8 = vadd.f32 %v856_v59, %v1894_v48  ;;  %v953_v15 = vadd.f32 %v952_v62, %v930_v58  ;;  %840 = vst [vmem:[%s1889_s30 + $0x38] sm:$0xff] %v1306_v0  ;;  %v877_v12 = vadd.f32 %v876_v1, %v1879_v38  ;;  %v933_v48 = vmul.f32 %v1904_v55, %v1904_v55 }
 0x178   : > { %v973_v13 = vadd.f32 %v972_v4, %v929_v5  ;;  %848 = vst [vmem:[%s1889_s30 + $0x78] sm:$0xff] %v1314_v7  ;;  %v941_v45 = vmul.f32 %v1996_v11, %v1996_v11  ;;  %v944_v50 = vmul.f32 %v735_v56, %v735_v56  ;;  %v945_v57 = vmul.f32 %v736_v54, %v736_v54 }
 0x179   : > { %v954_v14 = vadd.f32 %v953_v15, %v932_v10  ;;  %v878_v20 = vadd.f32 %v877_v12, %v1904_v55  ;;  %v858_v21 = vadd.f32 %v857_v8, %v1921_v3  ;;  %v1651_v0 = vmov 1966171168  }
 0x17a   : > { %v974_v23 = vadd.f32 %v973_v13, %v931_v27  ;;  %v895_v1 = vunpack.c.l.s4 %v1651_v0 }
 0x17b   : > { %v859_v28 = vadd.f32 %v858_v21, %v1945_v22  ;;  %v955_v38 = vadd.f32 %v954_v14, %v934_v31  ;;  %v879_v61 = vadd.f32 %v878_v20, %v1931_v9 }
 0x17c   : > { %v975_v30 = vadd.f32 %v974_v23, %v933_v48  ;;  %v896_v12 = vunpack.c.0.s8 %v895_v1 }
 0x17d   : > { %v860_v3 = vadd.f32 %v859_v28, %v1971_v44  ;;  %v956_v32 = vadd.f32 %v955_v38, %v936_v24  ;;  %v880_v55 = vadd.f32 %v879_v61, %v1953_v26  ;;  %v942_v26 = vmul.f32 %v2005_v25, %v2005_v25 }
 0x17e   : > { %v976_v34 = vadd.f32 %v975_v30, %v935_v29  ;;  %v899_v21 = vsub.s32 %v896_v12, %v1852_v17 }
 0x17f   : > { %v861_v22 = vadd.f32 %v860_v3, %v1989_v2  ;;  %v957_v39 = vadd.f32 %v956_v32, %v938_v6  ;;  %v881_v9 = vadd.f32 %v880_v55, %v1979_v49  ;;  %v943_v49 = vmul.f32 %v2012_v19, %v2012_v19 }
 0x180   : > { %v977_v41 = vadd.f32 %v976_v34, %v937_v33 }
 0x181   : > { %v958_v44 = vadd.f32 %v957_v39, %v940_v35  ;;  %v882_v42 = vadd.f32 %v881_v9, %v1996_v11  ;;  %v862_v43 = vadd.f32 %v861_v22, %v2005_v25 }
 0x182   : > { %v978_v36 = vadd.f32 %v977_v41, %v939_v40 }
 0x183   : > { %v959_v2 = vadd.f32 %v958_v44, %v942_v26  ;;  %v883_v46 = vadd.f32 %v882_v42, %v2012_v19  ;;  %v863_v47 = vadd.f32 %v862_v43, %v735_v56 }
 0x184   : > { %v979_v63 = vadd.f32 %v978_v36, %v941_v45 }
 0x185   : > { %v864_v51 = vrot.slane %v863_v47, 4  ;;  %v960_v18 = vadd.f32 %v959_v2, %v944_v50  ;;  %v884_v52 = vadd.f32 %v883_v46, %v736_v54 }
 0x186   : > { %v980_v53 = vadd.f32 %v979_v63, %v943_v49 }
 0x187   : > { %v865_v58 = vadd.f32 %v864_v51, %v863_v47  ;;  %v961_v25 = vrot.slane %v960_v18, 4  ;;  %v885_v60 = vrot.slane %v884_v52, 4 }
 0x188   : > { %v981_v37 = vadd.f32 %v980_v53, %v945_v57 }
 0x189   : > { %v866_v11 = vrot.slane %v865_v58, 2  ;;  %v962_v59 = vadd.f32 %v961_v25, %v960_v18  ;;  %v886_v62 = vadd.f32 %v885_v60, %v884_v52 }
 0x18a   : > { %v982_v4 = vrot.slane %v981_v37, 4 }
 0x18b   : > { %v867_v56 = vadd.f32 %v866_v11, %v865_v58  ;;  %v963_v5 = vrot.slane %v962_v59, 2  ;;  %v887_v7 = vrot.slane %v886_v62, 2 }
 0x18c   : > { %v983_v19 = vadd.f32 %v982_v4, %v981_v37 }
 0x18d   : > { %v868_v10 = vrot.slane %v867_v56, 1  ;;  %v964_v8 = vadd.f32 %v963_v5, %v962_v59  ;;  %v888_v15 = vadd.f32 %v887_v7, %v886_v62 }
 0x18e   : > { %v984_v54 = vrot.slane %v983_v19, 2 }
 0x18f   : > { %v889_v27 = vrot.slane %v888_v15, 1  ;;  %v965_v13 = vrot.slane %v964_v8, 1  ;;  %v869_v14 = vadd.f32 %v868_v10, %v867_v56 }
 0x190   : > { %v985_v31 = vadd.f32 %v984_v54, %v983_v19 }
 0x191   : > { %v890_v20 = vadd.f32 %v889_v27, %v888_v15  ;;  %v966_v24 = vadd.f32 %v965_v13, %v964_v8 }
 0x192   : > { %v986_v48 = vrot.slane %v985_v31, 1 }
 0x193   : > { %v893_v23 = vcombine.low %v869_v14, %v890_v20 }
 0x194   : > { %v987_v28 = vadd.f32 %v986_v48, %v985_v31 }
 0x195   : > { %v900_v38 = vrot.slane %v893_v23, %v899_v21 }
 0x196   : > { %v990_v61 = vcombine.low %v966_v24, %v987_v28 }
 0x197   : > { %v907_v29 = vrot.slane %v900_v38, %v899_v21 }
 0x198   : > { %v997_v30 = vrot.slane %v990_v61, %v899_v21  ;;  %1024 = sbr.rel (!%p2200_p4) target bundleno = 440 (0x1b8), region = 40 }
 0x199   : > { %913 = vst.msk [vmem:[%s2073_s9] sm:$0x3] %vm911_vm0, %v907_v29 }
 0x19a   : > { %v1004_v6 = vrot.slane %v997_v30, %v899_v21 }
 0x19c   : > { %1006 = vst.msk [vmem:[%s2076_s5] sm:$0x3] %vm911_vm0, %v1004_v6 }
 0x19d   : > { %s2211_s10 = smov (!%p1027_p13, %s1026_s10), 16 }
 0x19e   : > { %s2087_s11 = sshll.u32 %s2211_s10, 7 }
 0x19f   : > { %s1032_s13 = ssub.s32 2048, %s2087_s11 }
 0x1a0   : > { %1033 = vsyncadd %s1008_s25, %s1032_s13  ;;  %p1285_p5 = scmp.ne.s32.totalorder %s2087_s11, 0  ;;  %s1317_s14 = sshll.u32 %s1703_s19, 11 }
 0x1a1   : > { %s2097_s29 = scalar_lea.hbm %s2188_s2, %s1317_s14  ;;  %s1039_s22 = sshll.u32 %s1889_s30, 4  ;;  %s2100_s22 = int_to_ptr.vmem [resolvable:$true] %s1039_s22 }
 0x1a2   : > { %s1519_s8 = scalar_lea.vmem %s2100_s22, %s2087_s11  ;;  %s1652_s7 = smov [#allocation7]  }
 0x1a3   : > { %p1520_p1 = scmp.ne.s32.totalorder %s2100_s22, %s1519_s8  ;;  %s1523_s10 = sshll.u32 %s1652_s7, 4  ;;  %s1524_s10 = int_to_ptr.vmem [resolvable:$false] %s1523_s10 }
 0x1a4   : > { %s1525_s13 = scalar_lea.vmem %s1524_s10, 4096  ;;  %p1526_p3 = scmp.lt.s32.totalorder %s2100_s22, %s1524_s10 }
 0x1a5   : > { %p1521_p0 = pnand %p1520_p1, %p1285_p5  ;;  %p1527_p8 = scmp.lt.s32.totalorder %s1525_s13, %s1519_s8 }
 0x1a7   : > { %p1522_p7 = pneg %p1521_p0  ;;  %p1528_p9 = por %p1527_p8, %p1526_p3 }
 0x1a9   : > { %p1529_p6 = pnand %p1528_p9, %p1522_p7 }
 0x1ab   : > { %1532 = shalt.err (!%p1529_p6)
}
 0x1ac   : > { %s1533_s30 = scalar_lea.hbm %s2097_s29, %s2087_s11  ;;  %s1537_s26 = scalar_lea.hbm %s2188_s2, 3200 }
 0x1ad   : > { %p1534_p11 = scmp.ne.s32.totalorder %s2097_s29, %s1533_s30  ;;  %p1538_p10 = scmp.lt.s32.totalorder %s2097_s29, %s2188_s2 }
 0x1ae   : > { %p1539_p4 = scmp.lt.s32.totalorder %s1537_s26, %s1533_s30 }
 0x1af   : > { %p1535_p12 = pnand %p1534_p11, %p1285_p5 }
 0x1b0   : > { %p1540_p13 = por %p1539_p4, %p1538_p10 }
 0x1b1   : > { %p1536_p2 = pneg %p1535_p12 }
 0x1b3   : > { %p1541_p1 = pnand %p1540_p13, %p1536_p2 }
 0x1b5   : > { %1544 = shalt.err (!%p1541_p1)
}
 0x1b6   : > { %s1653_s8 = smov 128   ;;  %s1654_s13 = smov 8  }
 0x1b7   : > { %1045 = dma.vmem_to_hbm [thread:$0]  (%p1285_p5), %s2100_s22, %s2087_s11, %s2097_s29, %s1008_s25, %s1653_s8, %s1653_s8, %s1654_s13  }
 0x1b8 PF: > { %s1318_s14 = sshll.u32 %s1703_s19, 5  ;;  %s1056_s30 = sshll.u32 %s2073_s9, 4  ;;  %s1057_s30 = int_to_ptr.vmem [resolvable:$true] %s1056_s30 }
 0x1b9   : > { %s1054_s7 = scalar_lea.hbm %s2189_s3, %s1318_s14  ;;  %s1545_s10 = scalar_lea.vmem %s1057_s30, 32 }
 0x1ba   : > { %p1546_p0 = scmp.ne.s32.totalorder %s1057_s30, %s1545_s10  ;;  %p2201_p7 = scmp.ne.s32.totalorder %s2196_s27, 0 }
 0x1bb   : > { %s1655_s12 = smov [#allocation8]  }
 0x1bc   : > { %p1547_p3 = pnand %p1546_p0, %p2201_p7  ;;  %s1549_s25 = sshll.u32 %s1655_s12, 4  ;;  %s1550_s25 = int_to_ptr.vmem [resolvable:$false] %s1549_s25 }
 0x1bd   : > { %s1551_s11 = scalar_lea.vmem %s1550_s25, 64  ;;  %p1552_p5 = scmp.lt.s32.totalorder %s1057_s30, %s1550_s25 }
 0x1be   : > { %p1548_p8 = pneg %p1547_p3  ;;  %p1553_p9 = scmp.lt.s32.totalorder %s1551_s11, %s1545_s10 }
 0x1c0   : > { %p1554_p6 = por %p1553_p9, %p1552_p5 }
 0x1c2   : > { %p1555_p11 = pnand %p1554_p6, %p1548_p8 }
 0x1c4   : > { %1558 = shalt.err (!%p1555_p11)
}
 0x1c5   : > { %s1559_s9 = scalar_lea.hbm %s1054_s7, 32  ;;  %s1563_s8 = scalar_lea.hbm %s2189_s3, 64 }
 0x1c6   : > { %p1560_p12 = scmp.ne.s32.totalorder %s1054_s7, %s1559_s9  ;;  %p1564_p4 = scmp.lt.s32.totalorder %s1054_s7, %s2189_s3 }
 0x1c7   : > { %p1565_p13 = scmp.lt.s32.totalorder %s1563_s8, %s1559_s9 }
 0x1c8   : > { %p1561_p2 = pnand %p1560_p12, %p2201_p7 }
 0x1c9   : > { %p1566_p1 = por %p1565_p13, %p1564_p4 }
 0x1ca   : > { %p1562_p10 = pneg %p1561_p2 }
 0x1cc   : > { %p1567_p0 = pnand %p1566_p1, %p1562_p10 }
 0x1ce   : > { %1570 = shalt.err (!%p1567_p0)
}
 0x1cf   : > { %1357 = dma.vmem_to_hbm [thread:$0]  (%p2201_p7), %s1057_s30, 32, %s1054_s7, %s2082_s6  }
 0x1d0   : > { %s1068_s12 = scalar_lea.hbm %s2190_s4, %s1318_s14  ;;  %s1070_s25 = sshll.u32 %s2076_s5, 4  ;;  %s1071_s25 = int_to_ptr.vmem [resolvable:$true] %s1070_s25 }
 0x1d1   : > { %s1571_s11 = scalar_lea.vmem %s1071_s25, 32  ;;  %s1656_s9 = smov [#allocation10]  }
 0x1d2   : > { %p1572_p3 = scmp.ne.s32.totalorder %s1071_s25, %s1571_s11  ;;  %s1575_s29 = sshll.u32 %s1656_s9, 4  ;;  %s1576_s29 = int_to_ptr.vmem [resolvable:$false] %s1575_s29 }
 0x1d3   : > { %s1577_s22 = scalar_lea.vmem %s1576_s29, 64  ;;  %p1578_p9 = scmp.lt.s32.totalorder %s1071_s25, %s1576_s29 }
 0x1d4   : > { %p1573_p8 = pnand %p1572_p3, %p2201_p7  ;;  %p1579_p6 = scmp.lt.s32.totalorder %s1577_s22, %s1571_s11 }
 0x1d6   : > { %p1574_p5 = pneg %p1573_p8  ;;  %p1580_p11 = por %p1579_p6, %p1578_p9 }
 0x1d8   : > { %p1581_p12 = pnand %p1580_p11, %p1574_p5 }
 0x1da   : > { %1584 = shalt.err (!%p1581_p12)
}
 0x1db   : > { %s1585_s19 = scalar_lea.hbm %s1068_s12, 32  ;;  %s1589_s30 = scalar_lea.hbm %s2190_s4, 64 }
 0x1dc   : > { %p1586_p2 = scmp.ne.s32.totalorder %s1068_s12, %s1585_s19  ;;  %p1590_p13 = scmp.lt.s32.totalorder %s1068_s12, %s2190_s4 }
 0x1dd   : > { %p1591_p1 = scmp.lt.s32.totalorder %s1589_s30, %s1585_s19 }
 0x1de   : > { %p1587_p10 = pnand %p1586_p2, %p2201_p7 }
 0x1df   : > { %p1592_p0 = por %p1591_p1, %p1590_p13 }
 0x1e0   : > { %p1588_p4 = pneg %p1587_p10 }
 0x1e2   : > { %p1593_p3 = pnand %p1592_p0, %p1588_p4 }
 0x1e4   : > { %1596 = shalt.err (!%p1593_p3)
}
 0x1e5   : > { %1358 = dma.vmem_to_hbm [thread:$0]  (%p2201_p7), %s1071_s25, 32, %s1068_s12, %s2082_s6  }
 0x1e6 PF: > { %s1082_s13 = sand.u32 1, %s1631_s15   ;;  %p2202_p8 = scmp.ne.s32.totalorder %s2197_s28, 0 }
 0x1e7   : > { %p2203_p5 = scmp.ge.s32.totalorder %s1643_s18, 2  ;;  %s1083_s23 = scalar_lea.sflag [#allocation4], %s1082_s13 }
 0x1e9   : > { %p1367_p9 = pnand %p2203_p5, %p2202_p8 }
 0x1eb   : > { %p1368_p6 = pneg %p1367_p9 }
 0x1ed   : > { %1622 = dma.done.wait (%p1368_p6), %s1083_s23, 2048  }
 0x1ee   : > { %1624 = vsyncadd (%p1368_p6), %s1083_s23, 4294965248  ;;  %s1091_s26 = sand.u32 1, %s1211_s20  }
 0x1ef   : > { %s1092_s10 = scalar_lea.sflag [#allocation9], %s1091_s26 }
 0x1f0   : > { %1626 = dma.done.wait (%p1368_p6), %s1092_s10, 64  }
 0x1f1   : > { %1628 = vsyncadd (%p1368_p6), %s1092_s10, 4294967232  ;;  %p22_p7 = scmp.ge.s32.totalorder %s1707_s21, 4   ;;  %s2204_s15 = smov %s1635_s16 }
 0x1f2   : > { %s2205_s16 = smov %s1639_s17  ;;  %s2206_s17 = smov %s1719_s24 }
 0x1f3   : > { %s2207_s18 = smov %s1707_s21  ;;  %24 = sbr.rel (!%p22_p7) target bundleno = 8 (0x8), region = 109 }
 0x1f8   :  { %1106 = vsyncpa [#allocation3], 1 }
 0x1f9   :  { %1108 = vsyncpa [#allocation3 + $0x1], 1 }
 0x1fa   :  { %1109 = vsyncpa [#allocation6], 1 }
 0x1fb   :  { %1110 = vsyncpa [#allocation4], 1 }
 0x1fc   :  { %1112 = vsyncpa [#allocation4 + $0x1], 1 }
 0x1fd   :  { %1113 = vsyncpa [#allocation9], 1 }
 0x1fe   :  { %1115 = vsyncpa [#allocation9 + $0x1], 1 }

</bundles_post_ra>
